<compile_context>
chip_gen: v6e
topology: v6e:2x2x1
jax: 0.10.0
libtpu: 0.0.40
codegen_flags: <defaults>
</compile_context>

<pallas_src>
import functools

import jax
import jax.numpy as jnp
from jax.experimental import pallas as pl
from jax.experimental.pallas import tpu as pltpu

EPS = 1e-5


# ---------------------------------------------------------------- kernels ---

def _attn_fused_kernel(qh_ref, kh_ref, vh_ref, m_ref, r_ref, wf_ref, bf_ref,
                       g_ref, be_ref, o_ref, *, heads, scale):
    # qh: (1,H,Lq,D) bf16   kh,vh: (1,H,Lk,D) bf16   m: (1,1,Lq,Lk) f32
    # r : (1,Lq,E)   f32    wf: (H,D,E) bf16         bf,g,be: (1,E) f32
    qh = qh_ref[0]                               # (H, Lq, D)
    kh = kh_ref[0]                               # (H, Lk, D)
    vh = vh_ref[0]                               # (H, Lk, D)
    m = m_ref[0]                                 # (1, Lq, Lk), shared by heads

    # Batched QK^T over all heads; bf16 operands, f32 accumulation on the MXU.
    energy = jnp.einsum('hqd,hkd->hqk', qh, kh,
                        preferred_element_type=jnp.float32)     # (H, Lq, Lk)
    energy = jnp.where(m == 0, jnp.float32(-1e20), energy)      # mask first
    logits = energy * scale                                     # then scale
    logits = logits - jnp.max(logits, axis=-1, keepdims=True)
    e = jnp.exp(logits)
    att = e * pl.reciprocal(jnp.sum(e, axis=-1, keepdims=True), approx=True)

    ctx = jnp.einsum('hqk,hkd->hqd', att.astype(jnp.bfloat16), vh,
                     preferred_element_type=jnp.float32)        # (H, Lq, D)

    # fc_out over the concatenated heads, decomposed per head:
    #   concat(ctx) @ Wf == sum_h ctx[h] @ Wf[h*D:(h+1)*D, :]
    y = r_ref[0] + bf_ref[...]                                  # residual + bias
    for h in range(heads):
        y = y + jnp.dot(ctx[h].astype(jnp.bfloat16), wf_ref[h],
                        preferred_element_type=jnp.float32)

    # LayerNorm (f32 statistics).
    mu = jnp.mean(y, axis=-1, keepdims=True)
    var = jnp.mean((y - mu) ** 2, axis=-1, keepdims=True)
    yn = (y - mu) * jax.lax.rsqrt(var + EPS)
    o_ref[0] = (yn * g_ref[...] + be_ref[...]).astype(o_ref.dtype)


def _ffn_res_ln_kernel(x_ref, w1_ref, b1_ref, w2_ref, b2_ref, g_ref, be_ref,
                       o_ref):
    # x: (1,L,E) f32  w1: (E,F) bf16  b1: (1,F) f32  w2: (F,E) bf16
    x = x_ref[0]                                                 # (L, E) f32
    h = jnp.dot(x.astype(jnp.bfloat16), w1_ref[...],
                preferred_element_type=jnp.float32) + b1_ref[...]
    h = jnp.maximum(h, 0.0)
    f = jnp.dot(h.astype(jnp.bfloat16), w2_ref[...],
                preferred_element_type=jnp.float32) + b2_ref[...]
    y = f + x
    mu = jnp.mean(y, axis=-1, keepdims=True)
    var = jnp.mean((y - mu) ** 2, axis=-1, keepdims=True)
    yn = (y - mu) * jax.lax.rsqrt(var + EPS)
    o_ref[0] = (yn * g_ref[...] + be_ref[...]).astype(o_ref.dtype)


# --------------------------------------------------------------- wrappers ---

def attention_block(q, k, v, mask, fc_wT, fc_b, gamma, beta, heads):
    """LayerNorm(fc_out(multi-head attention(q, k, v, mask)) + q)."""
    N, Lq, E = q.shape
    Lk = k.shape[1]
    D = E // heads
    scale = 1.0 / float(E) ** 0.5
    # Host-level head split; bf16 halves the extra DMA bytes for these copies.
    qh = q.reshape(N, Lq, heads, D).transpose(0, 2, 1, 3).astype(jnp.bfloat16)
    kh = k.reshape(N, Lk, heads, D).transpose(0, 2, 1, 3).astype(jnp.bfloat16)
    vh = v.reshape(N, Lk, heads, D).transpose(0, 2, 1, 3).astype(jnp.bfloat16)
    # Mask de-duplicated across heads.
    mask_b = jnp.broadcast_to(mask, (N, 1, Lq, Lk)).astype(jnp.float32)
    # fc_out weight (in x out), split per head for the in-kernel decomposition.
    wf_h = fc_wT.reshape(heads, D, E).astype(jnp.bfloat16)

    return pl.pallas_call(
        functools.partial(_attn_fused_kernel, heads=heads, scale=scale),
        out_shape=jax.ShapeDtypeStruct((N, Lq, E), jnp.float32),
        grid_spec=pltpu.PrefetchScalarGridSpec(
            num_scalar_prefetch=0,
            grid=(N,),
            in_specs=[
                pl.BlockSpec((1, heads, Lq, D), lambda n: (n, 0, 0, 0)),
                pl.BlockSpec((1, heads, Lk, D), lambda n: (n, 0, 0, 0)),
                pl.BlockSpec((1, heads, Lk, D), lambda n: (n, 0, 0, 0)),
                pl.BlockSpec((1, 1, Lq, Lk), lambda n: (n, 0, 0, 0)),
                pl.BlockSpec((1, Lq, E), lambda n: (n, 0, 0)),
                pl.BlockSpec((heads, D, E), lambda n: (0, 0, 0)),
                pl.BlockSpec((1, E), lambda n: (0, 0)),
                pl.BlockSpec((1, E), lambda n: (0, 0)),
                pl.BlockSpec((1, E), lambda n: (0, 0)),
            ],
            out_specs=pl.BlockSpec((1, Lq, E), lambda n: (n, 0, 0)),
        ),
        compiler_params=pltpu.CompilerParams(
            dimension_semantics=("parallel",)),
    )(qh, kh, vh, mask_b, q, wf_h, fc_b.reshape(1, E),
      gamma.reshape(1, E), beta.reshape(1, E))


def ffn_res_ln(x, w1T, b1, w2T, b2, gamma, beta):
    # x: (N,L,E)  w1T: (E,F)  b1: (F,)  w2T: (F,E)  b2,gamma,beta: (E,)
    N, L, E = x.shape
    F = w1T.shape[1]
    return pl.pallas_call(
        _ffn_res_ln_kernel,
        out_shape=jax.ShapeDtypeStruct((N, L, E), jnp.float32),
        grid_spec=pltpu.PrefetchScalarGridSpec(
            num_scalar_prefetch=0,
            grid=(N,),
            in_specs=[
                pl.BlockSpec((1, L, E), lambda n: (n, 0, 0)),
                pl.BlockSpec((E, F), lambda n: (0, 0)),
                pl.BlockSpec((1, F), lambda n: (0, 0)),
                pl.BlockSpec((F, E), lambda n: (0, 0)),
                pl.BlockSpec((1, E), lambda n: (0, 0)),
                pl.BlockSpec((1, E), lambda n: (0, 0)),
                pl.BlockSpec((1, E), lambda n: (0, 0)),
            ],
            out_specs=pl.BlockSpec((1, L, E), lambda n: (n, 0, 0)),
        ),
        compiler_params=pltpu.CompilerParams(
            dimension_semantics=("parallel",)),
    )(x, w1T.astype(jnp.bfloat16), b1.reshape(1, F),
      w2T.astype(jnp.bfloat16), b2.reshape(1, E),
      gamma.reshape(1, E), beta.reshape(1, E))


def decoder_block_forward(x, value, key, src_mask, trg_mask, p):
    """Pallas implementation of DecoderBlock.forward (eval mode)."""
    heads = p["heads"]
    # --- decoder self-attention + fc_out + residual + norm (one fused call) ---
    query = attention_block(x, x, x, trg_mask,
                            p["dec_fc_wT"], p["dec_fc_b"],
                            p["norm_g"], p["norm_b"], heads)
    # --- transformer block: cross-attention + fc_out + residual + norm1 ---
    x2 = attention_block(query, key, value, src_mask,
                         p["tb_fc_wT"], p["tb_fc_b"],
                         p["norm1_g"], p["norm1_b"], heads)
    # --- transformer block: feed-forward + residual + norm2 ---
    out = ffn_res_ln(x2, p["ff_w1T"], p["ff_b1"], p["ff_w2T"], p["ff_b2"],
                     p["norm2_g"], p["norm2_b"])
    # TODO(synk): nn.Dropout layers are identity in eval mode (no RNG path here).
    return out


# --------------------------------------------------------- pure-JAX reference

def _self_attention_ref(values, keys, query, mask, fc_wT, fc_b, heads):
    # Matches the kernel's numerics: bf16 matmul operands, f32 accumulation.
    N, Lq, E = query.shape
    Lk = keys.shape[1]
    D = E // heads
    qh = query.reshape(N, Lq, heads, D).astype(jnp.bfloat16)
    kh = keys.reshape(N, Lk, heads, D).astype(jnp.bfloat16)
    vh = values.reshape(N, Lk, heads, D).astype(jnp.bfloat16)
    energy = jnp.einsum('nqhd,nkhd->nhqk', qh, kh,
                        preferred_element_type=jnp.float32)
    energy = jnp.where(mask == 0, jnp.float32(-1e20), energy)
    att = jax.nn.softmax(energy / float(E) ** 0.5, axis=3)
    out = jnp.einsum('nhql,nlhd->nqhd', att.astype(jnp.bfloat16), vh,
                     preferred_element_type=jnp.float32).reshape(N, Lq, E)
    return jnp.dot(out.astype(jnp.bfloat16), fc_wT.astype(jnp.bfloat16),
                   preferred_element_type=jnp.float32) + fc_b


def _ln_ref(x, g, b):
    mu = x.mean(-1, keepdims=True)
    var = ((x - mu) ** 2).mean(-1, keepdims=True)
    return (x - mu) / jnp.sqrt(var + EPS) * g + b


def decoder_block_ref(x, value, key, src_mask, trg_mask, p):
    heads = p["heads"]
    a1 = _self_attention_ref(x, x, x, trg_mask,
                             p["dec_fc_wT"], p["dec_fc_b"], heads)
    query = _ln_ref(a1 + x, p["norm_g"], p["norm_b"])
    a2 = _self_attention_ref(value, key, query, src_mask,
                             p["tb_fc_wT"], p["tb_fc_b"], heads)
    x2 = _ln_ref(a2 + query, p["norm1_g"], p["norm1_b"])
    h = jnp.maximum(jnp.dot(x2.astype(jnp.bfloat16),
                            p["ff_w1T"].astype(jnp.bfloat16),
                            preferred_element_type=jnp.float32) + p["ff_b1"], 0.0)
    f = jnp.dot(h.astype(jnp.bfloat16), p["ff_w2T"].astype(jnp.bfloat16),
                preferred_element_type=jnp.float32) + p["ff_b2"]
    return _ln_ref(f + x2, p["norm2_g"], p["norm2_b"])


# ------------------------------------------------------------------- main ---

if __name__ == "__main__":
    # Small shapes consistent with the module.
    N, Lq, Lk = 2, 8, 8
    embed_size, heads, forward_expansion = 32, 4, 4
    F = forward_expansion * embed_size

    key0 = jax.random.PRNGKey(0)
    ks = jax.random.split(key0, 12)

    x = jax.random.normal(ks[0], (N, Lq, embed_size), jnp.float32)
    value = jax.random.normal(ks[1], (N, Lk, embed_size), jnp.float32)
    enc_key = jax.random.normal(ks[2], (N, Lk, embed_size), jnp.float32)
    # causal target mask (N,1,Lq,Lq); full source mask (N,1,1,Lk)
    trg_mask = jnp.broadcast_to(jnp.tril(jnp.ones((Lq, Lq), jnp.float32)),
                                (N, 1, Lq, Lq))
    src_mask = jnp.ones((N, 1, 1, Lk), jnp.float32)

    s = 0.05
    params = {
        "heads": heads,
        # decoder SelfAttention fc_out (weights stored pre-transposed: in x out)
        "dec_fc_wT": s * jax.random.normal(ks[3], (embed_size, embed_size)),
        "dec_fc_b": s * jax.random.normal(ks[4], (embed_size,)),
        # decoder self.norm
        "norm_g": jnp.ones((embed_size,), jnp.float32),
        "norm_b": jnp.zeros((embed_size,), jnp.float32),
        # transformer_block attention fc_out
        "tb_fc_wT": s * jax.random.normal(ks[5], (embed_size, embed_size)),
        "tb_fc_b": s * jax.random.normal(ks[6], (embed_size,)),
        # transformer_block norm1 / norm2
        "norm1_g": jnp.ones((embed_size,), jnp.float32),
        "norm1_b": jnp.zeros((embed_size,), jnp.float32),
        "norm2_g": jnp.ones((embed_size,), jnp.float32),
        "norm2_b": jnp.zeros((embed_size,), jnp.float32),
        # feed-forward (pre-transposed: in x out)
        "ff_w1T": s * jax.random.normal(ks[7], (embed_size, F)),
        "ff_b1": s * jax.random.normal(ks[8], (F,)),
        "ff_w2T": s * jax.random.normal(ks[9], (F, embed_size)),
        "ff_b2": s * jax.random.normal(ks[10], (embed_size,)),
    }
    params = {k: (v if k == "heads" else v.astype(jnp.float32))
              for k, v in params.items()}

    out = decoder_block_forward(x, value, enc_key, src_mask, trg_mask, params)
    out = jax.block_until_ready(out)

    ref = decoder_block_ref(x, value, enc_key, src_mask, trg_mask, params)
    assert out.shape == (N, Lq, embed_size)
    # bf16 matmuls + approx reciprocal in the kernel -> loosened tolerance.
    assert jnp.allclose(out, ref, rtol=2e-2, atol=2e-2), (
        float(jnp.max(jnp.abs(out - ref))))

    print("KERNEL_OK")
</pallas_src>

<mosaic_0001>
module attributes {stable_mosaic.version = 11 : i64} {
  func.func @_attn_fused_kernel(%arg0: i32, %arg1: memref<1x4x8x8xbf16, #tpu.memory_space<vmem>>, %arg2: memref<1x4x8x8xbf16, #tpu.memory_space<vmem>>, %arg3: memref<1x4x8x8xbf16, #tpu.memory_space<vmem>>, %arg4: memref<1x1x8x8xf32, #tpu.memory_space<vmem>>, %arg5: memref<1x8x32xf32, #tpu.memory_space<vmem>>, %arg6: memref<4x8x32xbf16, #tpu.memory_space<vmem>>, %arg7: memref<1x32xf32, #tpu.memory_space<vmem>>, %arg8: memref<1x32xf32, #tpu.memory_space<vmem>>, %arg9: memref<1x32xf32, #tpu.memory_space<vmem>>, %arg10: memref<1x8x32xf32, #tpu.memory_space<vmem>>) attributes {dimension_semantics = [#tpu.dimension_semantics<parallel>], iteration_bounds = array<i64: 2>, scalar_prefetch = 0 : i64, scratch_operands = 0 : i64, tpu.core_type = #tpu.core_type<tc>, window_params = [{transform_indices = @transform_0, window_bounds = array<i64: 1, 4, 8, 8>}, {transform_indices = @transform_1, window_bounds = array<i64: 1, 4, 8, 8>}, {transform_indices = @transform_2, window_bounds = array<i64: 1, 4, 8, 8>}, {transform_indices = @transform_3, window_bounds = array<i64: 1, 1, 8, 8>}, {transform_indices = @transform_4, window_bounds = array<i64: 1, 8, 32>}, {pipeline_mode = #tpu.pipeline_mode<synchronous>, transform_indices = @transform_5, window_bounds = array<i64: 4, 8, 32>}, {pipeline_mode = #tpu.pipeline_mode<synchronous>, transform_indices = @transform_6, window_bounds = array<i64: 1, 32>}, {pipeline_mode = #tpu.pipeline_mode<synchronous>, transform_indices = @transform_7, window_bounds = array<i64: 1, 32>}, {pipeline_mode = #tpu.pipeline_mode<synchronous>, transform_indices = @transform_8, window_bounds = array<i64: 1, 32>}, {transform_indices = @transform_9, window_bounds = array<i64: 1, 8, 32>}]} {
    %c0 = arith.constant 0 : index
    %c0_0 = arith.constant 0 : index
    %c0_1 = arith.constant 0 : index
    %c0_2 = arith.constant 0 : index
    %0 = vector.load %arg1[%c0, %c0_0, %c0_1, %c0_2] : memref<1x4x8x8xbf16, #tpu.memory_space<vmem>>, vector<1x4x8x8xbf16>
    %1 = vector.shape_cast %0 : vector<1x4x8x8xbf16> to vector<4x8x8xbf16>
    %c0_3 = arith.constant 0 : index
    %c0_4 = arith.constant 0 : index
    %c0_5 = arith.constant 0 : index
    %c0_6 = arith.constant 0 : index
    %2 = vector.load %arg2[%c0_3, %c0_4, %c0_5, %c0_6] : memref<1x4x8x8xbf16, #tpu.memory_space<vmem>>, vector<1x4x8x8xbf16>
    %3 = vector.shape_cast %2 : vector<1x4x8x8xbf16> to vector<4x8x8xbf16>
    %c0_7 = arith.constant 0 : index
    %c0_8 = arith.constant 0 : index
    %c0_9 = arith.constant 0 : index
    %c0_10 = arith.constant 0 : index
    %4 = vector.load %arg3[%c0_7, %c0_8, %c0_9, %c0_10] : memref<1x4x8x8xbf16, #tpu.memory_space<vmem>>, vector<1x4x8x8xbf16>
    %5 = vector.shape_cast %4 : vector<1x4x8x8xbf16> to vector<4x8x8xbf16>
    %c0_11 = arith.constant 0 : index
    %c0_12 = arith.constant 0 : index
    %c0_13 = arith.constant 0 : index
    %c0_14 = arith.constant 0 : index
    %6 = vector.load %arg4[%c0_11, %c0_12, %c0_13, %c0_14] : memref<1x1x8x8xf32, #tpu.memory_space<vmem>>, vector<1x1x8x8xf32>
    %7 = vector.shape_cast %6 : vector<1x1x8x8xf32> to vector<1x8x8xf32>
    "tpu.trace_start"() <{level = 10 : i32, message = "hqd,hkd->hqk"}> : () -> ()
    %cst = arith.constant dense<0.000000e+00> : vector<4x8x8xf32>
    %8 = tpu.matmul %1, %3, %cst {dimension_numbers = #tpu.dot_dimension_numbers<[2], [2], [1], [1], [0, 0, 0, 1, 1, 1], [0], [0]>} : vector<4x8x8xbf16>, vector<4x8x8xbf16>, vector<4x8x8xf32> -> vector<4x8x8xf32>
    %cst_15 = arith.constant 0.000000e+00 : f32
    "tpu.trace_stop"() : () -> ()
    %9 = vector.broadcast %cst_15 : f32 to vector<1x8x8xf32>
    %10 = arith.cmpf oeq, %7, %9 : vector<1x8x8xf32>
    %cst_16 = arith.constant -1.000000e+20 : f32
    %11 = vector.shape_cast %10 : vector<1x8x8xi1> to vector<1x8x8xi1>
    %12 = vector.broadcast %11 : vector<1x8x8xi1> to vector<4x8x8xi1>
    %13 = vector.broadcast %cst_16 : f32 to vector<4x8x8xf32>
    %14 = arith.select %12, %13, %8 : vector<4x8x8xi1>, vector<4x8x8xf32>
    %cst_17 = arith.constant 0.176776692 : f32
    %15 = vector.broadcast %cst_17 : f32 to vector<4x8x8xf32>
    %16 = arith.mulf %14, %15 : vector<4x8x8xf32>
    %cst_18 = arith.constant dense<0xFF800000> : vector<4x8xf32>
    %17 = vector.multi_reduction <maximumf>, %16, %cst_18 [2] : vector<4x8x8xf32> to vector<4x8xf32>
    %18 = vector.shape_cast %17 : vector<4x8xf32> to vector<4x8x1xf32>
    %19 = vector.broadcast %18 : vector<4x8x1xf32> to vector<4x8x8xf32>
    %20 = arith.subf %16, %19 : vector<4x8x8xf32>
    %21 = math.exp %20 : vector<4x8x8xf32>
    %cst_19 = arith.constant dense<0.000000e+00> : vector<4x8xf32>
    %22 = vector.multi_reduction <add>, %21, %cst_19 [2] : vector<4x8x8xf32> to vector<4x8xf32>
    %23 = vector.shape_cast %22 : vector<4x8xf32> to vector<4x8x1xf32>
    %24 = tpu.reciprocal %23 {approx = true} : vector<4x8x1xf32> -> vector<4x8x1xf32>
    %25 = vector.broadcast %24 : vector<4x8x1xf32> to vector<4x8x8xf32>
    %26 = arith.mulf %21, %25 : vector<4x8x8xf32>
    %27 = arith.truncf %26 : vector<4x8x8xf32> to vector<4x8x8xbf16>
    "tpu.trace_start"() <{level = 10 : i32, message = "hqk,hkd->hqd"}> : () -> ()
    %cst_20 = arith.constant dense<0.000000e+00> : vector<4x8x8xf32>
    %28 = tpu.matmul %27, %5, %cst_20 {dimension_numbers = #tpu.dot_dimension_numbers<[2], [1], [1], [2], [0, 0, 0, 1, 1, 2], [0], [0]>} : vector<4x8x8xbf16>, vector<4x8x8xbf16>, vector<4x8x8xf32> -> vector<4x8x8xf32>
    "tpu.trace_stop"() : () -> ()
    %c0_21 = arith.constant 0 : index
    %c0_22 = arith.constant 0 : index
    %c0_23 = arith.constant 0 : index
    %29 = vector.load %arg5[%c0_21, %c0_22, %c0_23] : memref<1x8x32xf32, #tpu.memory_space<vmem>>, vector<1x8x32xf32>
    %30 = vector.shape_cast %29 : vector<1x8x32xf32> to vector<8x32xf32>
    %c0_24 = arith.constant 0 : index
    %c0_25 = arith.constant 0 : index
    %31 = vector.load %arg7[%c0_24, %c0_25] : memref<1x32xf32, #tpu.memory_space<vmem>>, vector<1x32xf32>
    %32 = vector.broadcast %31 : vector<1x32xf32> to vector<8x32xf32>
    %33 = arith.addf %30, %32 : vector<8x32xf32>
    %34 = vector.extract_strided_slice %28 {offsets = [0, 0, 0], sizes = [1, 8, 8], strides = [1, 1, 1]} : vector<4x8x8xf32> to vector<1x8x8xf32>
    %35 = vector.shape_cast %34 : vector<1x8x8xf32> to vector<8x8xf32>
    %36 = arith.truncf %35 : vector<8x8xf32> to vector<8x8xbf16>
    %c0_26 = arith.constant 0 : index
    %c0_27 = arith.constant 0 : index
    %c0_28 = arith.constant 0 : index
    %37 = vector.load %arg6[%c0_26, %c0_27, %c0_28] : memref<4x8x32xbf16, #tpu.memory_space<vmem>>, vector<1x8x32xbf16>
    %38 = vector.shape_cast %37 : vector<1x8x32xbf16> to vector<8x32xbf16>
    %cst_29 = arith.constant dense<0.000000e+00> : vector<8x32xf32>
    %39 = tpu.matmul %36, %38, %cst_29 {dimension_numbers = #tpu.dot_dimension_numbers<[1], [0], [0], [1], [0, 0, 1, 1], [], []>} : vector<8x8xbf16>, vector<8x32xbf16>, vector<8x32xf32> -> vector<8x32xf32>
    %40 = arith.addf %33, %39 : vector<8x32xf32>
    %41 = vector.extract_strided_slice %28 {offsets = [1, 0, 0], sizes = [1, 8, 8], strides = [1, 1, 1]} : vector<4x8x8xf32> to vector<1x8x8xf32>
    %42 = vector.shape_cast %41 : vector<1x8x8xf32> to vector<8x8xf32>
    %43 = arith.truncf %42 : vector<8x8xf32> to vector<8x8xbf16>
    %c1 = arith.constant 1 : index
    %c0_30 = arith.constant 0 : index
    %c0_31 = arith.constant 0 : index
    %44 = vector.load %arg6[%c1, %c0_30, %c0_31] : memref<4x8x32xbf16, #tpu.memory_space<vmem>>, vector<1x8x32xbf16>
    %45 = vector.shape_cast %44 : vector<1x8x32xbf16> to vector<8x32xbf16>
    %cst_32 = arith.constant dense<0.000000e+00> : vector<8x32xf32>
    %46 = tpu.matmul %43, %45, %cst_32 {dimension_numbers = #tpu.dot_dimension_numbers<[1], [0], [0], [1], [0, 0, 1, 1], [], []>} : vector<8x8xbf16>, vector<8x32xbf16>, vector<8x32xf32> -> vector<8x32xf32>
    %47 = arith.addf %40, %46 : vector<8x32xf32>
    %48 = vector.extract_strided_slice %28 {offsets = [2, 0, 0], sizes = [1, 8, 8], strides = [1, 1, 1]} : vector<4x8x8xf32> to vector<1x8x8xf32>
    %49 = vector.shape_cast %48 : vector<1x8x8xf32> to vector<8x8xf32>
    %50 = arith.truncf %49 : vector<8x8xf32> to vector<8x8xbf16>
    %c2 = arith.constant 2 : index
    %c0_33 = arith.constant 0 : index
    %c0_34 = arith.constant 0 : index
    %51 = vector.load %arg6[%c2, %c0_33, %c0_34] : memref<4x8x32xbf16, #tpu.memory_space<vmem>>, vector<1x8x32xbf16>
    %52 = vector.shape_cast %51 : vector<1x8x32xbf16> to vector<8x32xbf16>
    %cst_35 = arith.constant dense<0.000000e+00> : vector<8x32xf32>
    %53 = tpu.matmul %50, %52, %cst_35 {dimension_numbers = #tpu.dot_dimension_numbers<[1], [0], [0], [1], [0, 0, 1, 1], [], []>} : vector<8x8xbf16>, vector<8x32xbf16>, vector<8x32xf32> -> vector<8x32xf32>
    %54 = arith.addf %47, %53 : vector<8x32xf32>
    %55 = vector.extract_strided_slice %28 {offsets = [3, 0, 0], sizes = [1, 8, 8], strides = [1, 1, 1]} : vector<4x8x8xf32> to vector<1x8x8xf32>
    %56 = vector.shape_cast %55 : vector<1x8x8xf32> to vector<8x8xf32>
    %57 = arith.truncf %56 : vector<8x8xf32> to vector<8x8xbf16>
    %c3 = arith.constant 3 : index
    %c0_36 = arith.constant 0 : index
    %c0_37 = arith.constant 0 : index
    %58 = vector.load %arg6[%c3, %c0_36, %c0_37] : memref<4x8x32xbf16, #tpu.memory_space<vmem>>, vector<1x8x32xbf16>
    %59 = vector.shape_cast %58 : vector<1x8x32xbf16> to vector<8x32xbf16>
    %cst_38 = arith.constant dense<0.000000e+00> : vector<8x32xf32>
    %60 = tpu.matmul %57, %59, %cst_38 {dimension_numbers = #tpu.dot_dimension_numbers<[1], [0], [0], [1], [0, 0, 1, 1], [], []>} : vector<8x8xbf16>, vector<8x32xbf16>, vector<8x32xf32> -> vector<8x32xf32>
    %61 = arith.addf %54, %60 : vector<8x32xf32>
    %cst_39 = arith.constant dense<0.000000e+00> : vector<8xf32>
    %62 = vector.multi_reduction <add>, %61, %cst_39 [1] : vector<8x32xf32> to vector<8xf32>
    %63 = vector.shape_cast %62 : vector<8xf32> to vector<8x1xf32>
    %cst_40 = arith.constant 3.200000e+01 : f32
    %64 = vector.broadcast %cst_40 : f32 to vector<8x1xf32>
    %65 = arith.divf %63, %64 : vector<8x1xf32>
    %66 = vector.broadcast %65 : vector<8x1xf32> to vector<8x32xf32>
    %67 = arith.subf %61, %66 : vector<8x32xf32>
    %68 = arith.mulf %67, %67 : vector<8x32xf32>
    %cst_41 = arith.constant dense<0.000000e+00> : vector<8xf32>
    %69 = vector.multi_reduction <add>, %68, %cst_41 [1] : vector<8x32xf32> to vector<8xf32>
    %70 = vector.shape_cast %69 : vector<8xf32> to vector<8x1xf32>
    %cst_42 = arith.constant 3.200000e+01 : f32
    %71 = vector.broadcast %cst_42 : f32 to vector<8x1xf32>
    %72 = arith.divf %70, %71 : vector<8x1xf32>
    %73 = vector.broadcast %65 : vector<8x1xf32> to vector<8x32xf32>
    %74 = arith.subf %61, %73 : vector<8x32xf32>
    %cst_43 = arith.constant 9.99999974E-6 : f32
    %75 = vector.broadcast %cst_43 : f32 to vector<8x1xf32>
    %76 = arith.addf %72, %75 : vector<8x1xf32>
    %77 = math.rsqrt %76 : vector<8x1xf32>
    %78 = vector.broadcast %77 : vector<8x1xf32> to vector<8x32xf32>
    %79 = arith.mulf %74, %78 : vector<8x32xf32>
    %c0_44 = arith.constant 0 : index
    %c0_45 = arith.constant 0 : index
    %80 = vector.load %arg8[%c0_44, %c0_45] : memref<1x32xf32, #tpu.memory_space<vmem>>, vector<1x32xf32>
    %81 = vector.broadcast %80 : vector<1x32xf32> to vector<8x32xf32>
    %82 = arith.mulf %79, %81 : vector<8x32xf32>
    %c0_46 = arith.constant 0 : index
    %c0_47 = arith.constant 0 : index
    %83 = vector.load %arg9[%c0_46, %c0_47] : memref<1x32xf32, #tpu.memory_space<vmem>>, vector<1x32xf32>
    %84 = vector.broadcast %83 : vector<1x32xf32> to vector<8x32xf32>
    %85 = arith.addf %82, %84 : vector<8x32xf32>
    %c0_48 = arith.constant 0 : index
    %c0_49 = arith.constant 0 : index
    %c0_50 = arith.constant 0 : index
    %86 = vector.load %arg10[%c0_48, %c0_49, %c0_50] : memref<1x8x32xf32, #tpu.memory_space<vmem>>, vector<1x8x32xf32>
    %87 = vector.shape_cast %86 : vector<1x8x32xf32> to vector<8x32xf32>
    %88 = vector.shape_cast %85 : vector<8x32xf32> to vector<1x8x32xf32>
    tpu.vector_store %arg10[%c0_48, %c0_49, %c0_50], %88 {strides = array<i32>} : memref<1x8x32xf32, #tpu.memory_space<vmem>>, vector<1x8x32xf32>,
    return
  }
  func.func @transform_0(%arg0: i32) -> (i32, i32, i32, i32) {
    %c0_i32 = arith.constant 0 : i32
    %c0_i32_0 = arith.constant 0 : i32
    %c0_i32_1 = arith.constant 0 : i32
    %c0_i32_2 = arith.constant 0 : i32
    return %arg0, %c0_i32, %c0_i32_0, %c0_i32_1 : i32, i32, i32, i32
  }
  func.func @transform_1(%arg0: i32) -> (i32, i32, i32, i32) {
    %c0_i32 = arith.constant 0 : i32
    %c0_i32_0 = arith.constant 0 : i32
    %c0_i32_1 = arith.constant 0 : i32
    %c0_i32_2 = arith.constant 0 : i32
    return %arg0, %c0_i32, %c0_i32_0, %c0_i32_1 : i32, i32, i32, i32
  }
  func.func @transform_2(%arg0: i32) -> (i32, i32, i32, i32) {
    %c0_i32 = arith.constant 0 : i32
    %c0_i32_0 = arith.constant 0 : i32
    %c0_i32_1 = arith.constant 0 : i32
    %c0_i32_2 = arith.constant 0 : i32
    return %arg0, %c0_i32, %c0_i32_0, %c0_i32_1 : i32, i32, i32, i32
  }
  func.func @transform_3(%arg0: i32) -> (i32, i32, i32, i32) {
    %c0_i32 = arith.constant 0 : i32
    %c0_i32_0 = arith.constant 0 : i32
    %c0_i32_1 = arith.constant 0 : i32
    %c0_i32_2 = arith.constant 0 : i32
    return %arg0, %c0_i32, %c0_i32_0, %c0_i32_1 : i32, i32, i32, i32
  }
  func.func @transform_4(%arg0: i32) -> (i32, i32, i32) {
    %c0_i32 = arith.constant 0 : i32
    %c0_i32_0 = arith.constant 0 : i32
    %c0_i32_1 = arith.constant 0 : i32
    return %arg0, %c0_i32, %c0_i32_0 : i32, i32, i32
  }
  func.func @transform_5(%arg0: i32) -> (i32, i32, i32) {
    %c0_i32 = arith.constant 0 : i32
    %c0_i32_0 = arith.constant 0 : i32
    %c0_i32_1 = arith.constant 0 : i32
    %c0_i32_2 = arith.constant 0 : i32
    return %c0_i32, %c0_i32_0, %c0_i32_1 : i32, i32, i32
  }
  func.func @transform_6(%arg0: i32) -> (i32, i32) {
    %c0_i32 = arith.constant 0 : i32
    %c0_i32_0 = arith.constant 0 : i32
    %c0_i32_1 = arith.constant 0 : i32
    return %c0_i32, %c0_i32_0 : i32, i32
  }
  func.func @transform_7(%arg0: i32) -> (i32, i32) {
    %c0_i32 = arith.constant 0 : i32
    %c0_i32_0 = arith.constant 0 : i32
    %c0_i32_1 = arith.constant 0 : i32
    return %c0_i32, %c0_i32_0 : i32, i32
  }
  func.func @transform_8(%arg0: i32) -> (i32, i32) {
    %c0_i32 = arith.constant 0 : i32
    %c0_i32_0 = arith.constant 0 : i32
    %c0_i32_1 = arith.constant 0 : i32
    return %c0_i32, %c0_i32_0 : i32, i32
  }
  func.func @transform_9(%arg0: i32) -> (i32, i32, i32) {
    %c0_i32 = arith.constant 0 : i32
    %c0_i32_0 = arith.constant 0 : i32
    %c0_i32_1 = arith.constant 0 : i32
    return %arg0, %c0_i32, %c0_i32_0 : i32, i32, i32
  }
}

</mosaic_0001>

<bundles_post_ra>
// kernel: tpu_custom_call.1
= control target key start
LH: loop header
LB: loop body
LE: loop exit
PB: predicated region body
PF: predicated region fallthrough
CT: control target
= control target key end

     0   :  { %s2368_s0 = inlined_call_operand.hbm [shape: bf16[2,4,8,8], index: 0, kind: input, shape index: {}]   ;;  %s2369_s1 = inlined_call_operand.hbm [shape: bf16[2,4,8,8], index: 1, kind: input, shape index: {}]   ;;  %s2370_s2 = inlined_call_operand.hbm [shape: bf16[2,4,8,8], index: 2, kind: input, shape index: {}]   ;;  %s2371_s3 = inlined_call_operand.hbm [shape: f32[2,1,8,8], index: 3, kind: input, shape index: {}]   ;;  %s2372_s4 = inlined_call_operand.hbm [shape: f32[2,8,32], index: 4, kind: input, shape index: {}]   ;;  %s2373_s5 = inlined_call_operand.hbm [shape: bf16[4,8,32], index: 5, kind: input, shape index: {}]   ;;  %s2374_s6 = inlined_call_operand.vmem [shape: f32[1,32], index: 6, kind: input, shape index: {}]   ;;  %s2375_s7 = inlined_call_operand.vmem [shape: f32[1,32], index: 7, kind: input, shape index: {}]   ;;  %s2376_s8 = inlined_call_operand.vmem [shape: f32[1,32], index: 8, kind: input, shape index: {}]   ;;  %s2377_s9 = inlined_call_operand.hbm [shape: f32[2,8,32], index: 9, kind: output, shape index: {}]  }
   0x1   :  { %2396 = sst [smem:[#allocation25_spill]] %s2369_s1 }
   0x2   :  { %2397 = sst [smem:[#allocation26_spill]] %s2371_s3 }
   0x3   :  { %2398 = sst [smem:[#allocation27_spill]] %s2375_s7 }
   0x4   :  { %2399 = sst [smem:[#allocation28_spill]] %s2376_s8 }
   0x5   :  { %2400 = sst [smem:[#allocation29_spill]] %s2377_s9 }
   0x6   :  { %14 = vsyncpa [#allocation3], 0 }
   0x7   :  { %16 = vsyncpa [#allocation3 + $0x1], 0 }
   0x8   :  { %17 = vsyncpa [#allocation6], 0 }
   0x9   :  { %19 = vsyncpa [#allocation6 + $0x1], 0 }
   0xa   :  { %20 = vsyncpa [#allocation9], 0 }
   0xb   :  { %22 = vsyncpa [#allocation9 + $0x1], 0 }
   0xc   :  { %23 = vsyncpa [#allocation12], 0 }
   0xd   :  { %24 = vsyncpa [#allocation4], 0 }
   0xe   :  { %26 = vsyncpa [#allocation4 + $0x1], 0  ;;  %s1924_s30 = smov 0   ;;  %s1926_s10 = smov 0  }
   0xf   :  { %s1928_s11 = smov 0   ;;  %s1930_s12 = smov 0  }
  0x10 LB: > { %2401 = sst [smem:[#allocation19_spill]] %s1849_s30  ;;  %s1945_s13 = sadd.s32 1, %s1861_s12   ;;  %s1861_s12 = sphi %s1930_s12, %s2436_s12   ;;  %s1857_s11 = sphi %s1928_s11, %s2438_s11   ;;  %s1853_s10 = sphi %s1926_s10, %s2440_s10   ;;  %s1849_s30 = sphi %s1924_s30, %s2439_s30  }
  0x11   : > { %2402 = sst [smem:[#allocation20_spill]] %s1857_s11  ;;  %s39_s14 = sadd.s32 1, %s1857_s11 }
  0x12   : > { %2403 = sst [smem:[#allocation21_spill]] %s1861_s12  ;;  %s36_s15 = ssub.s32 %s1861_s12, %s1945_s13 }
  0x13   : > { %2404 = sst [smem:[#allocation22_spill]] %s1945_s13  ;;  %p2379_p0 = scmp.ne.s32.totalorder %s1857_s11, %s1853_s10 }
  0x14   : > { %p37_p1 = scmp.eq.s32.totalorder %s36_s15, 0  ;;  %p47_p2 = scmp.eq.s32.totalorder %s1861_s12, 0 }
  0x15   : > { %p1561_p5 = scmp.lt.s32.totalorder %s1861_s12, 2  ;;  %s1962_s17 = sand.u32 1, %s1857_s11  }
  0x16   : > { %s1954_s16 = scalar_select %p37_p1, %s1857_s11, %s39_s14  }
  0x17   : > { %p48_p3 = por %p47_p2, %p2379_p0  ;;  %s1965_s18 = sshll.u32 %s1962_s17, 4 }
  0x18   : > { %2405 = sst [smem:[#allocation23_spill]] %s1954_s16  ;;  %s1968_s19 = sshll.u32 %s1861_s12, 8 }
  0x19   : > { %p1970_p6 = pnand %p1561_p5, %p48_p3  ;;  %s2378_s21 = sand.u32 1, %s1861_s12  }
  0x1a   : > { %s2407_s1 = sld [smem:[#allocation25_spill]]  ;;  %s337_s25 = scalar_lea.vmem [#allocation5], %s1965_s18 }
  0x1b   : > { %s344_s26 = sshll.u32 %s337_s25, 4  ;;  %s1987_s28 = scalar_lea.sflag [#allocation6], %s2378_s21  ;;  %s1982_s26 = int_to_ptr.vmem [resolvable:$true] %s344_s26 }
  0x1c   : > { %p1993_p8 = pneg %p1970_p6 }
  0x20   : > { %s1979_s24 = scalar_lea.hbm %s2407_s1, %s1968_s19  ;;  %s1624_s23 = scalar_lea.hbm %s2407_s1, 512 }
  0x21   : > { %s1619_s29 = scalar_lea.hbm %s1979_s24, 256  ;;  %p1625_p11 = scmp.lt.s32.totalorder %s1979_s24, %s2407_s1 }
  0x22   : > { %p1620_p7 = scmp.ne.s32.totalorder %s1979_s24, %s1619_s29  ;;  %p1626_p12 = scmp.lt.s32.totalorder %s1624_s23, %s1619_s29 }
  0x24   : > { %p1622_p9 = pnand %p1993_p8, %p1620_p7  ;;  %p1627_p13 = por %p1626_p12, %p1625_p11 }
  0x26   : > { %p1623_p10 = pneg %p1622_p9 }
  0x28   : > { %p1628_p1 = pnand %p1627_p13, %p1623_p10 }
  0x2a   : > { %1631 = shalt.err (!%p1628_p1)
}
  0x2b   : > { %s1632_s21 = scalar_lea.vmem %s1982_s26, 256  ;;  %s1863_s16 = smov [#allocation5]  }
  0x2c   : > { %p1633_p2 = scmp.ne.s32.totalorder %s1982_s26, %s1632_s21  ;;  %s1637_s15 = sshll.u32 %s1863_s16, 4  ;;  %s1638_s15 = int_to_ptr.vmem [resolvable:$false] %s1637_s15 }
  0x2d   : > { %s1639_s22 = scalar_lea.vmem %s1638_s15, 512  ;;  %p1640_p7 = scmp.lt.s32.totalorder %s1982_s26, %s1638_s15 }
  0x2e   : > { %p1635_p3 = pnand %p1633_p2, %p1993_p8  ;;  %p1641_p9 = scmp.lt.s32.totalorder %s1639_s22, %s1632_s21 }
  0x30   : > { %p1636_p5 = pneg %p1635_p3  ;;  %p1642_p4 = por %p1641_p9, %p1640_p7 }
  0x32   : > { %p1643_p0 = pnand %p1642_p4, %p1636_p5 }
  0x34   : > { %1646 = shalt.err (!%p1643_p0)
}
  0x35   : > { %s2383_s27 = smov 64   ;;  %s2385_s29 = smov 4  }
  0x36   : > { %1546 = dma.hbm_to_vmem [thread:$0]  (!%p1970_p6), %s1979_s24, 256, %s1982_s26, %s1987_s28, %s2383_s27, %s2383_s27, %s2385_s29  }
  0x37   : > { %s1391_s16 = sshll.u32 %s1861_s12, 7  ;;  %s2409_s3 = sld [smem:[#allocation26_spill]] }
  0x38   : > { %s2410_s15 = sshll.u32 %s1962_s17, 3  ;;  %s2411_s13 = sand.u32 1, %s1861_s12  }
  0x39   : > { %s379_s22 = scalar_lea.vmem [#allocation8], %s2410_s15  ;;  %s2031_s9 = scalar_lea.sflag [#allocation9], %s2411_s13 }
  0x3a   : > { %s386_s1 = sshll.u32 %s379_s22, 4  ;;  %s387_s1 = int_to_ptr.vmem [resolvable:$true] %s386_s1 }
  0x3d   : > { %s2025_s25 = scalar_lea.hbm %s2409_s3, %s1391_s16  ;;  %s1652_s21 = scalar_lea.hbm %s2409_s3, 256 }
  0x3e   : > { %s1647_s8 = scalar_lea.hbm %s2025_s25, 128  ;;  %p1653_p11 = scmp.lt.s32.totalorder %s2025_s25, %s2409_s3 }
  0x3f   : > { %p1648_p0 = scmp.ne.s32.totalorder %s2025_s25, %s1647_s8  ;;  %p1654_p12 = scmp.lt.s32.totalorder %s1652_s21, %s1647_s8 }
  0x41   : > { %p1650_p4 = pnand %p1648_p0, %p1993_p8  ;;  %p1655_p13 = por %p1654_p12, %p1653_p11 }
  0x43   : > { %p1651_p10 = pneg %p1650_p4 }
  0x45   : > { %p1656_p1 = pnand %p1655_p13, %p1651_p10 }
  0x47   : > { %1659 = shalt.err (!%p1656_p1)
}
  0x48   : > { %s1660_s15 = scalar_lea.vmem %s387_s1, 128  ;;  %s1866_s13 = smov [#allocation8]  }
  0x49   : > { %p1661_p2 = scmp.ne.s32.totalorder %s387_s1, %s1660_s15  ;;  %s1665_s22 = sshll.u32 %s1866_s13, 4  ;;  %s1666_s22 = int_to_ptr.vmem [resolvable:$false] %s1665_s22 }
  0x4a   : > { %s1667_s29 = scalar_lea.vmem %s1666_s22, 256  ;;  %p1668_p7 = scmp.lt.s32.totalorder %s387_s1, %s1666_s22 }
  0x4b   : > { %p1663_p3 = pnand %p1661_p2, %p1993_p8  ;;  %p1669_p9 = scmp.lt.s32.totalorder %s1667_s29, %s1660_s15 }
  0x4d   : > { %p1664_p5 = pneg %p1663_p3  ;;  %p1670_p0 = por %p1669_p9, %p1668_p7 }
  0x4f   : > { %p1671_p4 = pnand %p1670_p0, %p1664_p5 }
  0x51   : > { %1674 = shalt.err (!%p1671_p4)
}
  0x52   : > { %1552 = dma.hbm_to_vmem [thread:$0]  (!%p1970_p6), %s2025_s25, 128, %s387_s1, %s2031_s9  }
  0x53   : > { %s2055_s29 = scalar_lea.hbm %s2372_s4, %s1391_s16  ;;  %s2058_s24 = sadd.s32 4294967295, %s1861_s12  }
  0x54   : > { %s1377_s26 = sadd.s32 4294967294, %s1861_s12   ;;  %p52_p10 = scmp.ne.s32.totalorder %s1853_s10, %s1849_s30 }
  0x55   : > { %p2391_p11 = scmp.eq.s32.totalorder %s2058_s24, 0  ;;  %p264_p12 = scmp.eq.s32.totalorder %s2058_s24, 1 }
  0x56   : > { %p270_p13 = scmp.eq.s32.totalorder %s1377_s26, 1  ;;  %p1378_p1 = scmp.ge.s32.totalorder %s1861_s12, 1 }
  0x57   : > { %p2068_p2 = por %p2391_p11, %p52_p10  ;;  %p2413_p3 = scmp.ne.s32.totalorder %s1857_s11, %s1853_s10 }
  0x58   : > { %p2079_p7 = por %p270_p13, %p52_p10  ;;  %p277_p9 = scmp.lt.s32.totalorder %s1861_s12, 3 }
  0x59   : > { %s2412_s1 = scalar_select %p2068_p2, 1, 0 }
  0x5a   : > { %p2075_p5 = por %p264_p12, %p2413_p3  ;;  %p2084_p0 = pnand %p1378_p1, %p277_p9 }
  0x5b   : > { %s2415_s25 = scalar_select %p2079_p7, 1, 0 }
  0x5c   : > { %s2414_s16 = scalar_select %p2075_p5, 1, 0 }
  0x5d   : > { %2416 = sst [smem:[#allocation24_spill]] %s2415_s25  ;;  %s1867_s23 = smov [#allocation11]  }
  0x5e   : > { %s2417_s21 = scalar_select %p2084_p0, 1, 0 }
  0x5f   : > { %s289_s15 = sshll.u32 %s1867_s23, 4  ;;  %p1536_p4 = pneg %p2084_p0  ;;  %s2088_s15 = int_to_ptr.vmem [resolvable:$true] %s289_s15 }
  0x60   : > { %s2096_s8 = scalar_lea.hbm %s2368_s0, %s1968_s19  ;;  %s316_s27 = scalar_lea.vmem [#allocation2], %s1965_s18 }
  0x61   : > { %s323_s26 = sshll.u32 %s316_s27, 4  ;;  %p2101_p10 = pnand %p1536_p4, %p2391_p11  ;;  %s2105_s26 = int_to_ptr.vmem [resolvable:$true] %s323_s26 }
  0x62   : > { %s313_s23 = scalar_lea.sflag [#allocation3], %s1962_s17  ;;  %s1675_s11 = scalar_lea.hbm %s2096_s8, 256 }
  0x63   : > { %s2418_s3 = scalar_select %p2101_p10, 1, 0 }
  0x64   : > { %p1676_p12 = scmp.ne.s32.totalorder %s2096_s8, %s1675_s11  ;;  %s1680_s12 = scalar_lea.hbm %s2368_s0, 512 }
  0x65   : > { %p1681_p3 = scmp.lt.s32.totalorder %s2096_s8, %s2368_s0  ;;  %p1682_p9 = scmp.lt.s32.totalorder %s1680_s12, %s1675_s11 }
  0x66   : > { %p1678_p13 = pnand %p1676_p12, %p1993_p8 }
  0x67   : > { %p1683_p4 = por %p1682_p9, %p1681_p3 }
  0x68   : > { %p1679_p1 = pneg %p1678_p13 }
  0x6a   : > { %p1684_p11 = pnand %p1683_p4, %p1679_p1 }
  0x6c   : > { %1687 = shalt.err (!%p1684_p11)
}
  0x6d   : > { %s1688_s27 = scalar_lea.vmem %s2105_s26, 256  ;;  %s1868_s7 = smov [#allocation2]  }
  0x6e   : > { %p1689_p7 = scmp.ne.s32.totalorder %s2105_s26, %s1688_s27  ;;  %s1693_s13 = sshll.u32 %s1868_s7, 4  ;;  %s1694_s13 = int_to_ptr.vmem [resolvable:$false] %s1693_s13 }
  0x6f   : > { %s1695_s22 = scalar_lea.vmem %s1694_s13, 512  ;;  %p1696_p5 = scmp.lt.s32.totalorder %s2105_s26, %s1694_s13 }
  0x70   : > { %p1691_p12 = pnand %p1689_p7, %p1993_p8  ;;  %p1697_p2 = scmp.lt.s32.totalorder %s1695_s22, %s1688_s27 }
  0x72   : > { %p1692_p13 = pneg %p1691_p12  ;;  %p1698_p0 = por %p1697_p2, %p1696_p5 }
  0x74   : > { %p1699_p10 = pnand %p1698_p0, %p1692_p13 }
  0x76   : > { %1702 = shalt.err (!%p1699_p10)
}
  0x77   : > { %s2419_s30 = smov 4   ;;  %s2420_s11 = smov 64  }
  0x78   : > { %1543 = dma.hbm_to_vmem [thread:$0]  (!%p1970_p6), %s2096_s8, 256, %s2105_s26, %s313_s23, %s2420_s11, %s2420_s11, %s2419_s30  }
  0x79   : > { %p2421_p11 = scmp.ne.s32.totalorder %s2418_s3, 0  ;;  %s1714_s7 = scalar_lea.vmem %s2088_s15, 256 }
  0x7a   : > { %p1715_p1 = scmp.ne.s32.totalorder %s2088_s15, %s1714_s7  ;;  %p1722_p5 = scmp.lt.s32.totalorder %s2088_s15, %s2088_s15 }
  0x7b   : > { %p1705_p7 = pneg %p2421_p11  ;;  %p1723_p0 = scmp.lt.s32.totalorder %s1714_s7, %s1714_s7 }
  0x7d   : > { %p1717_p3 = pnand %p1715_p1, %p1705_p7  ;;  %p1724_p10 = por %p1723_p0, %p1722_p5 }
  0x7f   : > { %p1718_p2 = pneg %p1717_p3 }
  0x81   : > { %p1725_p9 = pnand %p1724_p10, %p1718_p2 }
  0x83   : > { %1728 = shalt.err (!%p1725_p9)
}
  0x84   : > { %1539 = dma.hbm_to_vmem [thread:$0]  (!%p2421_p11), %s2373_s5, 256, %s2088_s15, [#allocation12], %s2420_s11, %s2420_s11, %s2419_s30  }
  0x85   : > { %s2150_s23 = scalar_lea.hbm %s2370_s2, %s1968_s19  ;;  %s358_s3 = scalar_lea.vmem [#allocation7], %s1965_s18 }
  0x86   : > { %s365_s27 = sshll.u32 %s358_s3, 4  ;;  %s2422_s13 = sshll.u32 %s1962_s17, 3  ;;  %s2153_s27 = int_to_ptr.vmem [resolvable:$true] %s365_s27 }
  0x87   : > { %s2157_s22 = scalar_lea.vmem [#allocation10], %s2422_s13  ;;  %s1729_s12 = scalar_lea.hbm %s2150_s23, 256 }
  0x88   : > { %s404_s7 = sshll.u32 %s2157_s22, 4  ;;  %p1730_p4 = scmp.ne.s32.totalorder %s2150_s23, %s1729_s12  ;;  %s405_s7 = int_to_ptr.vmem [resolvable:$true] %s404_s7 }
  0x89   : > { %s1734_s25 = scalar_lea.hbm %s2370_s2, 512  ;;  %p1735_p11 = scmp.lt.s32.totalorder %s2150_s23, %s2370_s2 }
  0x8a   : > { %p1732_p12 = pnand %p1730_p4, %p1993_p8  ;;  %p1736_p7 = scmp.lt.s32.totalorder %s1734_s25, %s1729_s12 }
  0x8c   : > { %p1733_p13 = pneg %p1732_p12  ;;  %p1737_p1 = por %p1736_p7, %p1735_p11 }
  0x8e   : > { %p1738_p3 = pnand %p1737_p1, %p1733_p13 }
  0x90   : > { %1741 = shalt.err (!%p1738_p3)
}
  0x91   : > { %s1742_s17 = scalar_lea.vmem %s2153_s27, 256  ;;  %s1869_s18 = smov [#allocation7]  }
  0x92   : > { %p1743_p2 = scmp.ne.s32.totalorder %s2153_s27, %s1742_s17  ;;  %s1747_s3 = sshll.u32 %s1869_s18, 4  ;;  %s1748_s3 = int_to_ptr.vmem [resolvable:$false] %s1747_s3 }
  0x93   : > { %s1749_s13 = scalar_lea.vmem %s1748_s3, 512  ;;  %p1750_p10 = scmp.lt.s32.totalorder %s2153_s27, %s1748_s3 }
  0x94   : > { %p1745_p5 = pnand %p1743_p2, %p1993_p8  ;;  %p1751_p9 = scmp.lt.s32.totalorder %s1749_s13, %s1742_s17 }
  0x96   : > { %p1746_p0 = pneg %p1745_p5  ;;  %p1752_p4 = por %p1751_p9, %p1750_p10 }
  0x98   : > { %p1753_p12 = pnand %p1752_p4, %p1746_p0 }
  0x9a   : > { %1756 = shalt.err (!%p1753_p12)
}
  0x9b   : > { %1549 = dma.hbm_to_vmem [thread:$0]  (!%p1970_p6), %s2150_s23, 256, %s2153_s27, %s1987_s28, %s2420_s11, %s2420_s11, %s2419_s30  }
  0x9c   : > { %s1757_s12 = scalar_lea.hbm %s2055_s29, 128  ;;  %s1762_s25 = scalar_lea.hbm %s2372_s4, 256 }
  0x9d   : > { %p1758_p13 = scmp.ne.s32.totalorder %s2055_s29, %s1757_s12  ;;  %p1763_p1 = scmp.lt.s32.totalorder %s2055_s29, %s2372_s4 }
  0x9e   : > { %p1764_p3 = scmp.lt.s32.totalorder %s1762_s25, %s1757_s12 }
  0x9f   : > { %p1760_p11 = pnand %p1758_p13, %p1993_p8 }
  0xa0   : > { %p1765_p2 = por %p1764_p3, %p1763_p1 }
  0xa1   : > { %p1761_p7 = pneg %p1760_p11 }
  0xa3   : > { %p1766_p5 = pnand %p1765_p2, %p1761_p7 }
  0xa5   : > { %1769 = shalt.err (!%p1766_p5)
}
  0xa6   : > { %s1770_s28 = scalar_lea.vmem %s405_s7, 128  ;;  %s1870_s30 = smov [#allocation10]  }
  0xa7   : > { %p1771_p0 = scmp.ne.s32.totalorder %s405_s7, %s1770_s28  ;;  %s1775_s11 = sshll.u32 %s1870_s30, 4  ;;  %s1776_s11 = int_to_ptr.vmem [resolvable:$false] %s1775_s11 }
  0xa8   : > { %s1777_s23 = scalar_lea.vmem %s1776_s11, 256  ;;  %p1778_p4 = scmp.lt.s32.totalorder %s405_s7, %s1776_s11 }
  0xa9   : > { %p1773_p10 = pnand %p1771_p0, %p1993_p8  ;;  %p1779_p12 = scmp.lt.s32.totalorder %s1777_s23, %s1770_s28 }
  0xab   : > { %p1774_p9 = pneg %p1773_p10  ;;  %p1780_p13 = por %p1779_p12, %p1778_p4 }
  0xad   : > { %p1781_p11 = pnand %p1780_p13, %p1774_p9 }
  0xaf   : > { %1784 = shalt.err (!%p1781_p11)
}
  0xb0   : > { %1555 = dma.hbm_to_vmem [thread:$0]  (!%p1970_p6), %s2055_s29, 128, %s405_s7, %s2031_s9  }
  0xb1   : > { %p2423_p7 = scmp.ne.s32.totalorder %s2417_s21, 0 }
  0xb2   : > { %s2206_s14 = sand.u32 (!%p2423_p7), 1, %s1853_s10   ;;  %p2424_p8 = scmp.ne.s32.totalorder (!%p2423_p7), %s2412_s1, 0 }
  0xb3   : > { %413 = sbr.rel (%p2423_p7) target bundleno = 1437 (0x59d), region = 56  ;;  %s1395_s27 = sshll.u32 (!%p2423_p7), %s2206_s14, 4 }
  0xb4   : > { %s416_s22 = scalar_lea.sflag (!%p2423_p7), [#allocation3], %s2206_s14  ;;  %s2210_s17 = scalar_lea.vmem (!%p2423_p7), [#allocation2], %s1395_s27 }
  0xb8   : > { %1828 = dma.done.wait (%p2424_p8), %s416_s22, 256  }
  0xb9   : > { %1830 = vsyncadd (%p2424_p8), %s416_s22, 4294967040  ;;  %s424_s9 = sand.u32 1, %s2058_s24   ;;  %s428_s29 = scalar_lea.vmem [#allocation5], %s1395_s27 }
  0xba   : > { %s425_s20 = scalar_lea.sflag [#allocation6], %s424_s9 }
  0xbb   : > { %1832 = dma.done.wait (%p2424_p8), %s425_s20, 512  }
  0xbc   : > { %1834 = vsyncadd (%p2424_p8), %s425_s20, 4294966784  ;;  %s2222_s21 = sshll.u32 %s2206_s14, 3  ;;  %s2224_s7 = scalar_lea.vmem [#allocation7], %s1395_s27 }
  0xbd   : > { %s443_s18 = scalar_lea.sflag [#allocation9], %s424_s9  ;;  %s446_s3 = scalar_lea.vmem [#allocation8], %s2222_s21 }
  0xbe   : > { %1836 = dma.done.wait (%p2424_p8), %s443_s18, 256  }
  0xbf   : > { %1838 = vsyncadd (%p2424_p8), %s443_s18, 4294967040  ;;  %s455_s13 = scalar_lea.vmem [#allocation10], %s2222_s21  ;;  %p2425_p6 = scmp.eq.s32.totalorder %s2058_s24, 0 }
  0xc1   : > { %1840 = dma.done.wait (%p2425_p6), [#allocation12], 256   ;;  %p2426_p1 = pmov %p2425_p6 }
  0xc2   : > { %v1871_v0 = vmov 0.0   ;;  %vm1872_vm0 = vmmov 0   ;;  %vm528_vm1 = vcmask 64512   ;;  %v519_v1 = vld [vmem:[%s428_s29] sm:$0xf]  ;;  %vm775_vm3 = vcmask 1043456  }
  0xc3   : > { %1842 = vsyncadd (%p2426_p1), [#allocation12], 4294967040  ;;  %1448 = vmatprep.subr.bf16.mxu0 %v1871_v0  ;;  %1454 = vmatprep.subr.bf16.mxu1 %v1871_v0  ;;  %v520_v2 = vld [vmem:[%s428_s29 + $0x4] sm:$0xf]  ;;  %v533_v3 = vsel %vm528_vm1, %v519_v1, 0  ;;  %vm1165_vm4 = vcmask 261120  }
  0xc4   : > { %1450 = vmatprep.mubr.msk.bf16.mxu0 %vm1872_vm0, %v1871_v0  ;;  %1456 = vmatprep.mubr.msk.bf16.mxu1 %vm1872_vm0, %v1871_v0  ;;  %v579_v4 = vsel %vm528_vm1, %v520_v2, 0  ;;  %v521_v5 = vld [vmem:[%s428_s29 + $0x8] sm:$0xf]  ;;  %v522_v6 = vld [vmem:[%s428_s29 + $0xc] sm:$0xf]  ;;  %v527_v13 = vld [vmem:[%s446_s3] sm:$0xff] }
  0xc5   : > { %1449 = vmatpush3.bf16.xpose.msra.mxu0 %v533_v3  ;;  %1455 = vmatpush3.bf16.xpose.msra.mxu1 %v579_v4  ;;  %v515_v7 = vld [vmem:[%s2210_s17] sm:$0xf]  ;;  %v516_v8 = vld [vmem:[%s2210_s17 + $0x4] sm:$0xf]  ;;  %v625_v9 = vsel %vm528_vm1, %v521_v5, 0  ;;  %v671_v10 = vsel %vm528_vm1, %v522_v6, 0 }
  0xc6   : > { %1460 = vmatprep.subr.bf16.mxu0 %v1871_v0  ;;  %1466 = vmatprep.subr.bf16.mxu1 %v1871_v0  ;;  %v517_v11 = vld [vmem:[%s2210_s17 + $0x8] sm:$0xf]  ;;  %v518_v12 = vld [vmem:[%s2210_s17 + $0xc] sm:$0xf]  ;;  %vm713_vm2 = vcmp.eq.f32.partialorder %v527_v13, 0.0  ;;  %s2427_s25 = sld [smem:[#allocation27_spill]] }
  0xc7   : > { %v523_v62 = vld [vmem:[%s2224_s7] sm:$0xf]  ;;  %v524_v63 = vld [vmem:[%s2224_s7 + $0x4] sm:$0xf]  ;;  %v526_v13 = vld [vmem:[%s2224_s7 + $0xc] sm:$0xf] }
  0xc8   : > { %v777_v1 = vsel %vm775_vm3, %v523_v62, 0  ;;  %v823_v2 = vsel %vm775_vm3, %v524_v63, 0  ;;  %s2428_s28 = sld [smem:[#allocation28_spill]]  ;;  %s1418_s30 = sshll.u32 %s2058_s24, 7 }
  0xc9   : > { %s513_s11 = scalar_lea.vmem [#allocation13], %s2222_s21  ;;  %s2429_s17 = sld [smem:[#allocation29_spill]] }
  0xca   : > { %s1211_s23 = sshll.u32 %s513_s11, 4  ;;  %s1198_s20 = scalar_lea.sflag [#allocation4], %s2206_s14  ;;  %s1212_s23 = int_to_ptr.vmem [resolvable:$true] %s1211_s23 }
  0xcb   : > { %s1785_s29 = scalar_lea.vmem %s1212_s23, 128  ;;  %p2430_p2 = scmp.ne.s32.totalorder %s2414_s16, 0 }
  0xcc   : > { %1451 = vmatmul.mubr.msk.bf16.vlgmr.msra.gmra.mxu0 %vm528_vm1, %v515_v7  ;;  %1457 = vmatmul.mubr.msk.bf16.vlgmr.msra.gmra.mxu1 %vm528_vm1, %v516_v8  ;;  %v525_v8 = vld [vmem:[%s2224_s7 + $0x8] sm:$0xf]  ;;  %p1786_p3 = scmp.ne.s32.totalorder %s1212_s23, %s1785_s29  ;;  %s1873_s7 = smov [#allocation13]  }
  0xcd   : > { %1461 = vmatpush3.bf16.xpose.msra.mxu0 %v625_v9  ;;  %1467 = vmatpush3.bf16.xpose.msra.mxu1 %v671_v10  ;;  %s1789_s18 = sshll.u32 %s1873_s7, 4  ;;  %s1790_s18 = int_to_ptr.vmem [resolvable:$false] %s1789_s18 }
  0xce   : > { %1462 = vmatprep.mubr.msk.bf16.mxu0 %vm1872_vm0, %v1871_v0  ;;  %1468 = vmatprep.mubr.msk.bf16.mxu1 %vm1872_vm0, %v1871_v0  ;;  %p1787_p5 = pnand %p1786_p3, %p2430_p2  ;;  %s1791_s24 = scalar_lea.vmem %s1790_s18, 256 }
  0xcf   : > { %1472 = vmatprep.subr.bf16.mxu0 %v1871_v0  ;;  %1478 = vmatprep.subr.bf16.mxu1 %v1871_v0  ;;  %s1209_s9 = scalar_lea.hbm %s2429_s17, %s1418_s30  ;;  %p1792_p10 = scmp.lt.s32.totalorder %s1212_s23, %s1790_s18 }
  0xd0   : > { %p1788_p0 = pneg %p1787_p5  ;;  %p1793_p9 = scmp.lt.s32.totalorder %s1791_s24, %s1785_s29 }
  0xd2   : > { %p1794_p4 = por %p1793_p9, %p1792_p10 }
  0xd4   : > { %1463 = vmatmul.mubr.msk.bf16.vlgmr.msra.gmra.mxu0 %vm528_vm1, %v517_v11  ;;  %1469 = vmatmul.mubr.msk.bf16.vlgmr.msra.gmra.mxu1 %vm528_vm1, %v518_v12  ;;  %v869_v11 = vsel %vm775_vm3, %v525_v8, 0  ;;  %p1795_p12 = pnand %p1794_p4, %p1788_p0 }
  0xd5   : > { %1474 = vmatprep.mubr.msk.bf16.mxu0 %vm1872_vm0, %v1871_v0  ;;  %1480 = vmatprep.mubr.msk.bf16.mxu1 %vm1872_vm0, %v1871_v0 }
  0xd6   : > { %1473 = vmatpush3.bf16.msra.mxu0 %v777_v1  ;;  %1479 = vmatpush3.bf16.msra.mxu1 %v823_v2 }
  0xd7   : > { %1484 = vmatprep.subr.bf16.mxu0 %v1871_v0  ;;  %1490 = vmatprep.subr.bf16.mxu1 %v1871_v0 }
 0x18c   : > { %v569_v14 = vpop.f32.mrf.mxu0  ;;  %v615_v15 = vpop.f32.mrf.mxu1 }
 0x18d   : > { %v716_v16 = vsel %vm713_vm2, -1e+20, %v569_v14  ;;  %v717_v17 = vsel %vm713_vm2, -1e+20, %v615_v15 }
 0x18e   : > { %v720_v18 = vmul.f32 0.17677669, %v716_v16  ;;  %v721_v19 = vmul.f32 0.17677669, %v717_v17  ;;  %v1452_v20 = vpop.f32.mrf.mxu0  ;;  %v1458_v21 = vpop.f32.mrf.mxu1  ;;  %v915_v16 = vsel %vm775_vm3, %v526_v13, 0 }
 0x190   : > { %v572_v22 = vpop.f32.mrf.mxu0  ;;  %v618_v23 = vpop.f32.mrf.mxu1  ;;  %v724_v24 = vsel %vm528_vm1, %v720_v18, -inf  ;;  %v727_v27 = vsel %vm528_vm1, %v721_v19, -inf }
 0x191   : > { %725 = vmax.xlane.f32.xlu0 %v724_v24 }
 0x192   : > { %v1453_v25 = vpop.f32.mrf.mxu0  ;;  %v1459_v26 = vpop.f32.mrf.mxu1 }
 0x193   : > { %v1017_v25 = vld [vmem:[#allocation11 + $0x4] sm:$0xf] }
 0x194   : > { %v661_v28 = vpop.f32.mrf.mxu0  ;;  %v707_v29 = vpop.f32.mrf.mxu1  ;;  %v1022_v26 = vsel %vm775_vm3, %v1017_v25, 0 }
 0x195   : > { %v718_v30 = vsel %vm713_vm2, -1e+20, %v661_v28  ;;  %v719_v31 = vsel %vm713_vm2, -1e+20, %v707_v29  ;;  %728 = vmax.xlane.f32.xlu0 %v727_v27  ;;  %v1067_v27 = vld [vmem:[#allocation11 + $0x8] sm:$0xf] }
 0x196   : > { %v722_v32 = vmul.f32 0.17677669, %v718_v30  ;;  %v723_v33 = vmul.f32 0.17677669, %v719_v31  ;;  %v1464_v34 = vpop.f32.mrf.mxu0  ;;  %v1470_v35 = vpop.f32.mrf.mxu1  ;;  %v1072_v30 = vsel %vm775_vm3, %v1067_v27, 0 }
 0x198   : > { %v664_v36 = vpop.f32.mrf.mxu0  ;;  %v710_v37 = vpop.f32.mrf.mxu1  ;;  %v730_v38 = vsel %vm528_vm1, %v722_v32, -inf  ;;  %v733_v41 = vsel %vm528_vm1, %v723_v33, -inf }
 0x199   : > { %731 = vmax.xlane.f32.xlu1 %v730_v38 }
 0x19a   : > { %v1465_v39 = vpop.f32.mrf.mxu0  ;;  %v1471_v40 = vpop.f32.mrf.mxu1 }
 0x19d   : > { %734 = vmax.xlane.f32.xlu1 %v733_v41 }
 0x21a   : > { %v726_v42 = vpop.xlane.xlu0 %725 }
 0x21b   : > { %v736_v43 = vsub.f32 %v720_v18, %v726_v42  ;;  %v967_v18 = vld [vmem:[#allocation11] sm:$0xf] }
 0x21c   : > { %v972_v21 = vsel %vm775_vm3, %v967_v18, 0 }
 0x21d   : > { %v740_v44 = vmul.f32 1.442695, %v736_v43 }
 0x21e   : > { %v729_v45 = vpop.xlane.xlu0 %728 }
 0x21f   : > { %1601 = vpow2.f32 %v740_v44  ;;  %v737_v46 = vsub.f32 %v721_v19, %v729_v45 }
 0x221   : > { %v742_v47 = vmul.f32 1.442695, %v737_v46 }
 0x222   : > { %v732_v48 = vpop.xlane.xlu1 %731 }
 0x223   : > { %1603 = vpow2.f32 %v742_v47  ;;  %v738_v49 = vsub.f32 %v722_v32, %v732_v48  ;;  %v1117_v32 = vld [vmem:[#allocation11 + $0xc] sm:$0xf] }
 0x224   : > { %v1122_v36 = vsel %vm775_vm3, %v1117_v32, 0 }
 0x225   : > { %v744_v50 = vmul.f32 1.442695, %v738_v49 }
 0x226   : > { %v735_v51 = vpop.xlane.xlu1 %734 }
 0x227   : > { %1605 = vpow2.f32 %v744_v50  ;;  %v739_v52 = vsub.f32 %v723_v33, %v735_v51  ;;  %v957_v51 = vld [vmem:[%s455_s13] sm:$0xff] }
 0x229   : > { %v746_v53 = vmul.f32 1.442695, %v739_v52 }
 0x22b   : > { %1607 = vpow2.f32 %v746_v53 }
 0x22c   : > { %v1602_v54 = vpop.eup %1601 }
 0x22d   : > { %v748_v55 = vsel %vm528_vm1, %v1602_v54, 0.0 }
 0x22e   : > { %749 = vadd.xlane.f32.xlu0 %v748_v55 }
 0x230   : > { %v1604_v56 = vpop.eup %1603 }
 0x231   : > { %v751_v57 = vsel %vm528_vm1, %v1604_v56, 0.0 }
 0x232   : > { %752 = vadd.xlane.f32.xlu1 %v751_v57 }
 0x234   : > { %v1606_v58 = vpop.eup %1605 }
 0x235   : > { %v754_v59 = vsel %vm528_vm1, %v1606_v58, 0.0 }
 0x236   : > { %755 = vadd.xlane.f32.xlu0 %v754_v59 }
 0x238   : > { %v1608_v60 = vpop.eup %1607 }
 0x239   : > { %v757_v61 = vsel %vm528_vm1, %v1608_v60, 0.0 }
 0x23a   : > { %758 = vadd.xlane.f32.xlu1 %v757_v61 }
 0x2b7   : > { %v750_v3 = vpop.xlane.xlu0 %749 }
 0x2b8   : > { %1609 = vrcp.f32 %v750_v3 }
 0x2bb   : > { %v753_v4 = vpop.xlane.xlu1 %752 }
 0x2bc   : > { %1611 = vrcp.f32 %v753_v4 }
 0x2bf   : > { %v756_v5 = vpop.xlane.xlu0 %755 }
 0x2c0   : > { %1613 = vrcp.f32 %v756_v5 }
 0x2c3   : > { %v759_v6 = vpop.xlane.xlu1 %758 }
 0x2c4   : > { %1615 = vrcp.f32 %v759_v6 }
 0x2c5   : > { %v1610_v7 = vpop.eup %1609 }
 0x2c6   : > { %v764_v9 = vmul.f32 %v1610_v7, %v1602_v54 }
 0x2c8   : > { %v768_v10 = vpack.c.bf16 %v764_v9, %v764_v9 }
 0x2c9   : > { %v1612_v12 = vpop.eup %1611 }
 0x2ca   : > { %1475 = vmatmul.mubr.msk.bf16.vlgmr.msra.gmra.mxu0 %vm528_vm1, %v768_v10  ;;  %v765_v14 = vmul.f32 %v1612_v12, %v1604_v56 }
 0x2cb   : > { %1485 = vmatpush3.bf16.msra.mxu0 %v869_v11  ;;  %1486 = vmatprep.mubr.msk.bf16.mxu0 %vm1872_vm0, %v1871_v0 }
 0x2cc   : > { %v769_v15 = vpack.c.bf16 %v765_v14, %v765_v14  ;;  %1496 = vmatprep.subr.bf16.mxu0 %v1871_v0 }
 0x2cd   : > { %v1614_v17 = vpop.eup %1613 }
 0x2ce   : > { %1481 = vmatmul.mubr.msk.bf16.vlgmr.msra.gmra.mxu1 %vm528_vm1, %v769_v15  ;;  %v766_v19 = vmul.f32 %v1614_v17, %v1606_v58 }
 0x2cf   : > { %1491 = vmatpush3.bf16.msra.mxu1 %v915_v16  ;;  %1492 = vmatprep.mubr.msk.bf16.mxu1 %vm1872_vm0, %v1871_v0 }
 0x2d0   : > { %v770_v20 = vpack.c.bf16 %v766_v19, %v766_v19  ;;  %1502 = vmatprep.subr.bf16.mxu1 %v1871_v0 }
 0x2d1   : > { %v1616_v22 = vpop.eup %1615 }
 0x2d2   : > { %1487 = vmatmul.mubr.msk.bf16.vlgmr.msra.gmra.mxu0 %vm528_vm1, %v770_v20  ;;  %v767_v23 = vmul.f32 %v1616_v22, %v1608_v60  ;;  %v1415_v20 = vld [vmem:[%s2427_s25] ss:$0 sm:$0xff] }
 0x2d3   : > { %1497 = vmatpush3.bf16.msra.mxu0 %v972_v21  ;;  %1498 = vmatprep.mubr.msk.bf16.mxu0 %vm1872_vm0, %v1871_v0  ;;  %v1416_v22 = vld [vmem:[%s2428_s28] ss:$0 sm:$0xff] }
 0x2d4   : > { %v771_v24 = vpack.c.bf16 %v767_v23, %v767_v23  ;;  %1508 = vmatprep.subr.bf16.mxu0 %v1871_v0 }
 0x2d6   : > { %1493 = vmatmul.mubr.msk.bf16.vlgmr.msra.gmra.mxu1 %vm528_vm1, %v771_v24 }
 0x2d7   : > { %1504 = vmatprep.mubr.msk.bf16.mxu1 %vm1872_vm0, %v1871_v0  ;;  %1503 = vmatpush3.bf16.msra.mxu1 %v1022_v26 }
 0x2d8   : > { %1514 = vmatprep.subr.bf16.mxu1 %v1871_v0 }
 0x38a   : > { %v813_v28 = vpop.f32.mrf.mxu0 }
 0x38b   : > { %v966_v29 = vpack.c.bf16 %v813_v28, %v813_v28 }
 0x38c   : > { %v1476_v31 = vpop.f32.mrf.mxu0 }
 0x38d   : > { %1499 = vmatmul.mubr.msk.bf16.vlgmr.msra.gmra.mxu0 %vm528_vm1, %v966_v29 }
 0x38e   : > { %v816_v33 = vpop.f32.mrf.mxu0  ;;  %v859_v34 = vpop.f32.mrf.mxu1  ;;  %1509 = vmatpush3.bf16.msra.mxu0 %v1072_v30  ;;  %1510 = vmatprep.mubr.msk.bf16.mxu0 %vm1872_vm0, %v1871_v0 }
 0x38f   : > { %v1015_v35 = vpack.c.bf16 %v859_v34, %v859_v34 }
 0x390   : > { %v1477_v37 = vpop.f32.mrf.mxu0  ;;  %v1482_v38 = vpop.f32.mrf.mxu1 }
 0x391   : > { %1505 = vmatmul.mubr.msk.bf16.vlgmr.msra.gmra.mxu1 %vm528_vm1, %v1015_v35 }
 0x392   : > { %v862_v39 = vpop.f32.mrf.mxu1  ;;  %v905_v40 = vpop.f32.mrf.mxu0  ;;  %1515 = vmatpush3.bf16.msra.mxu1 %v1122_v36  ;;  %1516 = vmatprep.mubr.msk.bf16.mxu1 %vm1872_vm0, %v1871_v0  ;;  %v1410_v0 = vld [vmem:[%s2374_s6] ss:$0 sm:$0xff] }
 0x393   : > { %v1065_v41 = vpack.c.bf16 %v905_v40, %v905_v40  ;;  %v965_v54 = vadd.f32 %v1410_v0, %v957_v51 }
 0x394   : > { %v1483_v42 = vpop.f32.mrf.mxu1  ;;  %v1488_v43 = vpop.f32.mrf.mxu0 }
 0x395   : > { %1511 = vmatmul.mubr.msk.bf16.vlgmr.msra.gmra.mxu0 %vm528_vm1, %v1065_v41 }
 0x396   : > { %v908_v44 = vpop.f32.mrf.mxu0  ;;  %v951_v45 = vpop.f32.mrf.mxu1 }
 0x397   : > { %v1115_v46 = vpack.c.bf16 %v951_v45, %v951_v45 }
 0x398   : > { %v1489_v47 = vpop.f32.mrf.mxu0  ;;  %v1494_v48 = vpop.f32.mrf.mxu1 }
 0x399   : > { %1517 = vmatmul.mubr.msk.bf16.vlgmr.msra.gmra.mxu1 %vm528_vm1, %v1115_v46 }
 0x39a   : > { %v954_v49 = vpop.f32.mrf.mxu1 }
 0x39c   : > { %v1495_v50 = vpop.f32.mrf.mxu1 }
 0x44d   : > { %v1008_v52 = vpop.f32.mrf.mxu0 }
 0x44e   : > { %v1014_v59 = vadd.f32 %v1008_v52, %v965_v54 }
 0x44f   : > { %v1500_v53 = vpop.f32.mrf.mxu0 }
 0x451   : > { %v1011_v55 = vpop.f32.mrf.mxu0  ;;  %v1058_v56 = vpop.f32.mrf.mxu1 }
 0x452   : > { %v1064_v62 = vadd.f32 %v1058_v56, %v1014_v59 }
 0x453   : > { %v1501_v57 = vpop.f32.mrf.mxu0  ;;  %v1506_v58 = vpop.f32.mrf.mxu1 }
 0x455   : > { %v1061_v60 = vpop.f32.mrf.mxu1  ;;  %v1108_v61 = vpop.f32.mrf.mxu0 }
 0x456   : > { %v1114_v2 = vadd.f32 %v1108_v61, %v1064_v62 }
 0x457   : > { %v1507_v63 = vpop.f32.mrf.mxu1  ;;  %v1512_v1 = vpop.f32.mrf.mxu0 }
 0x459   : > { %v1111_v3 = vpop.f32.mrf.mxu0  ;;  %v1158_v4 = vpop.f32.mrf.mxu1 }
 0x45a   : > { %v1164_v5 = vadd.f32 %v1158_v4, %v1114_v2 }
 0x45b   : > { %v1513_v6 = vpop.f32.mrf.mxu0  ;;  %v1518_v7 = vpop.f32.mrf.mxu1 }
 0x45c   : > { %v1166_v8 = vsel %vm1165_vm4, %v1164_v5, 0.0 }
 0x45d   : > { %v1161_v9 = vpop.f32.mrf.mxu1  ;;  %1167 = vadd.xlane.f32.xlu0 %v1166_v8 }
 0x45f   : > { %v1519_v10 = vpop.f32.mrf.mxu1 }
 0x4e6   : > { %v1168_v11 = vpop.xlane.xlu0 %1167 }
 0x4e7   : > { %v1170_v12 = vmul.f32 0.03125, %v1168_v11 }
 0x4e9   : > { %v1171_v13 = vsub.f32 %v1164_v5, %v1170_v12 }
 0x4eb   : > { %v1172_v14 = vmul.f32 %v1171_v13, %v1171_v13 }
 0x4ed   : > { %v1173_v15 = vsel %vm1165_vm4, %v1172_v14, 0.0 }
 0x4ee   : > { %1174 = vadd.xlane.f32.xlu1 %v1173_v15 }
 0x577   : > { %v1175_v16 = vpop.xlane.xlu1 %1174 }
 0x578   : > { %v1176_v17 = vmul.f32 0.03125, %v1175_v16 }
 0x57a   : > { %v1177_v18 = vadd.f32 1e-05, %v1176_v17 }
 0x57c   : > { %1617 = vrsqrt.f32 %v1177_v18 }
 0x589   : > { %v1618_v19 = vpop.eup %1617 }
 0x58a   : > { %v1179_v21 = vmul.f32 %v1618_v19, %v1171_v13 }
 0x58c   : > { %v1187_v23 = vmul.f32 %v1415_v20, %v1179_v21 }
 0x58e   : > { %v1195_v24 = vadd.f32 %v1416_v22, %v1187_v23 }
 0x590   : > { %1196 = vst.msk [vmem:[%s513_s11] sm:$0xff] %vm1165_vm4, %v1195_v24 }
 0x591   : > { %1798 = shalt.err (!%p1795_p12)
}
 0x592   : > { %s1799_s21 = scalar_lea.hbm %s1209_s9, 128  ;;  %s1803_s13 = scalar_lea.hbm %s2429_s17, 256 }
 0x593   : > { %p1800_p13 = scmp.ne.s32.totalorder %s1209_s9, %s1799_s21  ;;  %p1804_p8 = scmp.lt.s32.totalorder %s1209_s9, %s2429_s17 }
 0x594   : > { %p1805_p6 = scmp.lt.s32.totalorder %s1803_s13, %s1799_s21 }
 0x595   : > { %p1801_p11 = pnand %p1800_p13, %p2430_p2 }
 0x596   : > { %p1806_p1 = por %p1805_p6, %p1804_p8 }
 0x597   : > { %p1802_p7 = pneg %p1801_p11 }
 0x599   : > { %p1807_p3 = pnand %p1806_p1, %p1802_p7 }
 0x59b   : > { %1810 = shalt.err (!%p1807_p3)
}
 0x59c   : > { %1534 = dma.vmem_to_hbm [thread:$0]  (%p2430_p2), %s1212_s23, 128, %s1209_s9, %s1198_s20  }
 0x59d PF: > { %s2431_s15 = sld [smem:[#allocation19_spill]] }
 0x59e   : > { %s2432_s19 = sld [smem:[#allocation24_spill]] }
 0x59f   : > { %s2433_s25 = sld [smem:[#allocation21_spill]] }
 0x5a3   : > { %s1223_s8 = sand.u32 1, %s2431_s15  }
 0x5a4   : > { %p2434_p5 = scmp.ne.s32.totalorder %s2432_s19, 0  ;;  %s1224_s26 = scalar_lea.sflag [#allocation4], %s1223_s8 }
 0x5a5   : > { %p2435_p0 = scmp.ge.s32.totalorder %s2433_s25, 2 }
 0x5a7   : > { %p1557_p10 = pnand %p2435_p0, %p2434_p5 }
 0x5a9   : > { %p1558_p9 = pneg %p1557_p10 }
 0x5ab   : > { %1844 = dma.done.wait (%p1558_p9), %s1224_s26, 128  }
 0x5ac   : > { %1846 = vsyncadd (%p1558_p9), %s1224_s26, 4294967168  ;;  %s2436_s12 = sld [smem:[#allocation22_spill]]  ;;  %s2439_s30 = smov %s1853_s10 }
 0x5ad   : > { %s2437_s28 = sld [smem:[#allocation20_spill]] }
 0x5ae   : > { %s2438_s11 = sld [smem:[#allocation23_spill]] }
 0x5b2   : > { %p29_p4 = scmp.ge.s32.totalorder %s2436_s12, 4  }
 0x5b3   : > { %s2440_s10 = smov %s2437_s28 }
 0x5b4   :  { %31 = sbr.rel (!%p29_p4) target bundleno = 16 (0x10), region = 156 }
 0x5b9   :  { %1229 = vsyncpa [#allocation3], 1 }
 0x5ba   :  { %1231 = vsyncpa [#allocation3 + $0x1], 1 }
 0x5bb   :  { %1232 = vsyncpa [#allocation6], 1 }
 0x5bc   :  { %1234 = vsyncpa [#allocation6 + $0x1], 1 }
 0x5bd   :  { %1235 = vsyncpa [#allocation9], 1 }
 0x5be   :  { %1237 = vsyncpa [#allocation9 + $0x1], 1 }
 0x5bf   :  { %1238 = vsyncpa [#allocation12], 1 }
 0x5c0   :  { %1239 = vsyncpa [#allocation4], 1 }
 0x5c1   :  { %1241 = vsyncpa [#allocation4 + $0x1], 1 }

</bundles_post_ra>
